<compile_context>
chip_gen: v7x
topology: tpu7x:2x2x1
jax: 0.10.0
libtpu: 0.0.40
codegen_flags: <defaults>
</compile_context>

<pallas_src>
import jax
import jax.numpy as jnp
from jax.experimental import pallas as pl
from jax.experimental.pallas import tpu as pltpu

IN_FEATURES = 100
OUT_FEATURES = 512


def _sigmoid1(x):
    # sigmoid(x) == 0.5 * tanh(0.5*x) + 0.5 : single EUP op per element.
    return 0.5 * jnp.tanh(0.5 * x) + 0.5


def _fused_kernel(x_ref, w_ref, cw_ref, cb_ref, o_ref):
    # x_ref: (tm, 100) VMEM; w_ref: (100, 512) VMEM (resident across M tiles)
    # cw_ref, cb_ref: (1,) SMEM scalars (single-channel 1x1 conv weight / bias)
    v1 = jnp.dot(x_ref[...], w_ref[...], preferred_element_type=jnp.float32)
    v2 = _sigmoid1(v1)
    v4 = _sigmoid1(v2 - 0.85)
    v5 = v4 * cw_ref[0] + cb_ref[0]          # Conv2d(1,1,1) == scale + bias
    o_ref[...] = _sigmoid1(v5)


def prepare_params(w1, conv_w, conv_b):
    """One-time parameter prep (outside the per-call hot path).

    w1:     (512, 100) float32  -- PyTorch Linear weight layout
    conv_w: (1, 1, 1, 1), conv_b: (1,)
    Returns the transposed weight (100, 512) plus scalar conv params.
    """
    w_t = jnp.transpose(w1).astype(jnp.float32)            # (100, 512), no K pad
    cw = conv_w.reshape(1).astype(jnp.float32)
    cb = conv_b.reshape(1).astype(jnp.float32)
    return w_t, cw, cb


def _pick_tiling(mp):
    """mp: M rounded up to a multiple of 8. Returns (tm_or_None, Mt)."""
    if mp <= 512:
        return None, mp                       # gridless single-block path
    # Prefer an exact divisor (no extra pad) with at least 2 grid steps so
    # the "parallel" axis can be split across v7x's two TensorCores.
    for tm in (2048, 1024, 512, 256):
        if mp % tm == 0 and mp // tm >= 2:
            return tm, mp
    # Fallback: single pad up to a multiple of 512 (>=2 steps since mp > 512).
    tm = 512
    mt = -(-mp // tm) * tm
    return tm, mt


@jax.jit
def model_forward(x_nchw, w_t, cw, cb):
    """x_nchw: (N, 1, H, 100) float32 -> (N, 1, H, 512) float32."""
    N, C, H, K = x_nchw.shape
    assert C == 1 and K == IN_FEATURES
    M = N * C * H

    x_flat = x_nchw.reshape(M, K).astype(jnp.float32)

    mp = M + ((-M) % 8)                       # sublane-multiple rows
    tm, Mt = _pick_tiling(mp)
    if Mt != M:                               # at most one pad, straight to Mt
        x_flat = jnp.pad(x_flat, ((0, Mt - M), (0, 0)))

    if tm is None:
        # Small M: no grid, whole-array VMEM refs (single-buffered).
        out_flat = pl.pallas_call(
            _fused_kernel,
            out_shape=jax.ShapeDtypeStruct((Mt, OUT_FEATURES), jnp.float32),
            in_specs=[
                pl.BlockSpec(memory_space=pltpu.VMEM),
                pl.BlockSpec(memory_space=pltpu.VMEM),
                pl.BlockSpec(memory_space=pltpu.SMEM),
                pl.BlockSpec(memory_space=pltpu.SMEM),
            ],
            out_specs=pl.BlockSpec(memory_space=pltpu.VMEM),
        )(x_flat, w_t, cw, cb)
    else:
        # Tiled M axis; weight stays resident in VMEM (index_map (0,0)).
        out_flat = pl.pallas_call(
            _fused_kernel,
            out_shape=jax.ShapeDtypeStruct((Mt, OUT_FEATURES), jnp.float32),
            grid=(Mt // tm,),
            in_specs=[
                pl.BlockSpec((tm, IN_FEATURES), lambda i: (i, 0)),
                pl.BlockSpec((IN_FEATURES, OUT_FEATURES), lambda i: (0, 0)),
                pl.BlockSpec(memory_space=pltpu.SMEM),
                pl.BlockSpec(memory_space=pltpu.SMEM),
            ],
            out_specs=pl.BlockSpec((tm, OUT_FEATURES), lambda i: (i, 0)),
            compiler_params=pltpu.CompilerParams(
                dimension_semantics=("parallel",),
                vmem_limit_bytes=48 * 1024 * 1024,
            ),
        )(x_flat, w_t, cw, cb)

    out = out_flat if Mt == M else out_flat[:M]
    return out.reshape(N, C, H, OUT_FEATURES)


def reference_forward(x_nchw, w1, conv_w, conv_b):
    v1 = jnp.einsum("nchk,ok->ncho", x_nchw, w1)
    v2 = jax.nn.sigmoid(v1)
    v3 = v2 - 0.85
    v4 = jax.nn.sigmoid(v3)
    v5 = v4 * conv_w.reshape(()) + conv_b.reshape(())
    return jax.nn.sigmoid(v5)


if __name__ == "__main__":
    key = jax.random.PRNGKey(0)
    k_x, k_x2, k_w1, k_cw, k_cb = jax.random.split(key, 5)

    # Deterministic parameter init (shapes match the nn.Module).
    w1 = jax.random.normal(k_w1, (OUT_FEATURES, IN_FEATURES), jnp.float32) * 0.1
    conv_w = jax.random.normal(k_cw, (1, 1, 1, 1), jnp.float32)
    conv_b = jax.random.normal(k_cb, (1,), jnp.float32)

    # One-time parameter prep (transpose happens once, not per call).
    w_t, cw, cb = prepare_params(w1, conv_w, conv_b)

    # Small-M input (NCHW, single channel so Conv2d(1,1,1) is well-defined).
    x = jax.random.normal(k_x, (1, 1, 8, IN_FEATURES), dtype=jnp.float32)
    out = model_forward(x, w_t, cw, cb)
    jax.block_until_ready(out)
    ref = reference_forward(x, w1, conv_w, conv_b)
    assert out.shape == (1, 1, 8, OUT_FEATURES)
    assert jnp.allclose(out, ref, atol=1e-5, rtol=1e-5)

    # Larger-M input exercising the tiled (resident-weight, >=2-step "parallel") path.
    x2 = jax.random.normal(k_x2, (2, 1, 512, IN_FEATURES), dtype=jnp.float32)
    out2 = model_forward(x2, w_t, cw, cb)
    jax.block_until_ready(out2)
    ref2 = reference_forward(x2, w1, conv_w, conv_b)
    assert out2.shape == (2, 1, 512, OUT_FEATURES)
    assert jnp.allclose(out2, ref2, atol=1e-5, rtol=1e-5)

    print("KERNEL_OK")
</pallas_src>

<mosaic_0001>
module attributes {stable_mosaic.version = 11 : i64} {
  func.func @_fused_kernel(%arg0: memref<8x100xf32, #tpu.memory_space<vmem>>, %arg1: memref<100x512xf32, #tpu.memory_space<vmem>>, %arg2: memref<1xf32, #tpu.memory_space<smem>>, %arg3: memref<1xf32, #tpu.memory_space<smem>>, %arg4: memref<8x512xf32, #tpu.memory_space<vmem>>) attributes {dimension_semantics = [], scalar_prefetch = 0 : i64, scratch_operands = 0 : i64, tpu.core_type = #tpu.core_type<tc>} {
    %c0 = arith.constant 0 : index
    %c0_0 = arith.constant 0 : index
    %0 = vector.load %arg0[%c0, %c0_0] : memref<8x100xf32, #tpu.memory_space<vmem>>, vector<8x100xf32>
    %c0_1 = arith.constant 0 : index
    %c0_2 = arith.constant 0 : index
    %1 = vector.load %arg1[%c0_1, %c0_2] : memref<100x512xf32, #tpu.memory_space<vmem>>, vector<100x512xf32>
    %cst = arith.constant dense<0.000000e+00> : vector<8x512xf32>
    %2 = tpu.matmul %0, %1, %cst {dimension_numbers = #tpu.dot_dimension_numbers<[1], [0], [0], [1], [0, 0, 1, 1], [], []>} : vector<8x100xf32>, vector<100x512xf32>, vector<8x512xf32> -> vector<8x512xf32>
    %cst_3 = arith.constant 5.000000e-01 : f32
    %3 = vector.broadcast %cst_3 : f32 to vector<8x512xf32>
    %4 = arith.mulf %3, %2 : vector<8x512xf32>
    %5 = math.tanh %4 : vector<8x512xf32>
    %cst_4 = arith.constant 5.000000e-01 : f32
    %6 = vector.broadcast %cst_4 : f32 to vector<8x512xf32>
    %7 = arith.mulf %6, %5 : vector<8x512xf32>
    %cst_5 = arith.constant 5.000000e-01 : f32
    %8 = vector.broadcast %cst_5 : f32 to vector<8x512xf32>
    %9 = arith.addf %7, %8 : vector<8x512xf32>
    %cst_6 = arith.constant 8.500000e-01 : f32
    %10 = vector.broadcast %cst_6 : f32 to vector<8x512xf32>
    %11 = arith.subf %9, %10 : vector<8x512xf32>
    %cst_7 = arith.constant 5.000000e-01 : f32
    %12 = vector.broadcast %cst_7 : f32 to vector<8x512xf32>
    %13 = arith.mulf %12, %11 : vector<8x512xf32>
    %14 = math.tanh %13 : vector<8x512xf32>
    %cst_8 = arith.constant 5.000000e-01 : f32
    %15 = vector.broadcast %cst_8 : f32 to vector<8x512xf32>
    %16 = arith.mulf %15, %14 : vector<8x512xf32>
    %cst_9 = arith.constant 5.000000e-01 : f32
    %17 = vector.broadcast %cst_9 : f32 to vector<8x512xf32>
    %18 = arith.addf %16, %17 : vector<8x512xf32>
    %c0_10 = arith.constant 0 : index
    %19 = memref.load %arg2[%c0_10] : memref<1xf32, #tpu.memory_space<smem>>
    %20 = vector.broadcast %19 : f32 to vector<8x512xf32>
    %21 = arith.mulf %18, %20 : vector<8x512xf32>
    %c0_11 = arith.constant 0 : index
    %22 = memref.load %arg3[%c0_11] : memref<1xf32, #tpu.memory_space<smem>>
    %23 = vector.broadcast %22 : f32 to vector<8x512xf32>
    %24 = arith.addf %21, %23 : vector<8x512xf32>
    %cst_12 = arith.constant 5.000000e-01 : f32
    %25 = vector.broadcast %cst_12 : f32 to vector<8x512xf32>
    %26 = arith.mulf %25, %24 : vector<8x512xf32>
    %27 = math.tanh %26 : vector<8x512xf32>
    %cst_13 = arith.constant 5.000000e-01 : f32
    %28 = vector.broadcast %cst_13 : f32 to vector<8x512xf32>
    %29 = arith.mulf %28, %27 : vector<8x512xf32>
    %cst_14 = arith.constant 5.000000e-01 : f32
    %30 = vector.broadcast %cst_14 : f32 to vector<8x512xf32>
    %31 = arith.addf %29, %30 : vector<8x512xf32>
    %c0_15 = arith.constant 0 : index
    %c0_16 = arith.constant 0 : index
    %32 = vector.load %arg4[%c0_15, %c0_16] : memref<8x512xf32, #tpu.memory_space<vmem>>, vector<8x512xf32>
    tpu.vector_store %arg4[%c0_15, %c0_16], %31 {strides = array<i32>} : memref<8x512xf32, #tpu.memory_space<vmem>>, vector<8x512xf32>,
    return
  }
}

</mosaic_0001>

<bundles_post_ra>
// kernel: model_forward.1
= control target key start
LH: loop header
LB: loop body
LE: loop exit
PB: predicated region body
PF: predicated region fallthrough
CT: control target
= control target key end

     0   :  { %11 = vsyncpa [#allocation5], 0  ;;  %s527_s0 = inlined_call_operand.vmem [shape: f32[8,100], index: 0, kind: input, shape index: {}]   ;;  %s528_s1 = inlined_call_operand.hbm [shape: f32[100,512], index: 1, kind: input, shape index: {}]   ;;  %s529_s2 = inlined_call_operand.<no memory space> [shape: f32[1], index: 2, kind: input, shape index: {}]   ;;  %s530_s3 = inlined_call_operand.<no memory space> [shape: f32[1], index: 3, kind: input, shape index: {}]   ;;  %s531_s4 = inlined_call_operand.hbm [shape: f32[8,512], index: 4, kind: output, shape index: {}]  }
   0x1   :  { %12 = vsyncpa [#allocation6], 0  ;;  %s464_s15 = smov [#allocation4]   ;;  %s416_s19 = scalar_lea.hbm %s528_s1, 6656 }
   0x2   :  { %s20_s16 = sshll.u32 %s464_s15, 4  ;;  %p417_p0 = scmp.ne.s32.totalorder %s528_s1, %s416_s19  ;;  %s21_s16 = int_to_ptr.vmem [resolvable:$true] %s20_s16 }
   0x3   :  { %p420_p1 = scmp.lt.u32.totalorder %s416_s19, %s528_s1 }
   0x5   :  { %p422_p2 = pnand %p420_p1, %p417_p0 }
   0x7   :  { %425 = shalt.err (!%p422_p2)
}
   0x8   :  { %s426_s24 = scalar_lea.vmem %s21_s16, 6656  ;;  %p431_p4 = scmp.lt.s32.totalorder %s21_s16, %s21_s16 }
   0x9   :  { %p427_p3 = scmp.ne.s32.totalorder %s21_s16, %s426_s24  ;;  %p432_p5 = scmp.lt.s32.totalorder %s426_s24, %s426_s24 }
   0xb   :  { %p433_p6 = por %p432_p5, %p431_p4 }
   0xd   :  { %p434_p7 = pnand %p433_p6, %p427_p3 }
   0xf   :  { %437 = shalt.err (!%p434_p7)
}
  0x10   :  { %s465_s25 = smov 512   ;;  %s466_s26 = smov 32  }
  0x11   :  { %26 = dma.hbm_to_vmem [thread:$0]  %s528_s1, 6656, %s21_s16, [#allocation5], %s465_s25, %s465_s25, %s466_s26  }
  0x12   :  { %460 = dma.done.wait [#allocation5], 6656  }
  0x13   :  { %461 = vsyncadd [#allocation5], 4294960640  ;;  %v467_v0 = vmov 0.0   ;;  %v36_v1 = vld [vmem:[#allocation4 + $0x8] sm:$0xff]  ;;  %v38_v3 = vld [vmem:[#allocation4 + $0x18] sm:$0xff]  ;;  %vm91_vm0 = vcmask 1043456  }
  0x14   :  { %168 = vmatprep.mubr.f32.mxu0 %v467_v0  ;;  %239 = vmatprep.mubr.f32.mxu1 %v467_v0  ;;  %v40_v2 = vld [vmem:[#allocation4 + $0x28] sm:$0xff]  ;;  %v42_v5 = vld [vmem:[#allocation4 + $0x38] sm:$0xff]  ;;  %v35_v6 = vld [vmem:[#allocation4] sm:$0xff]  ;;  %vm87_vm1 = vcmask 818176  }
  0x15   :  { %v339_v4 = vpack.c.bf16 %v40_v2, %v36_v1  ;;  %v39_v7 = vld [vmem:[#allocation4 + $0x20] sm:$0xff]  ;;  %v363_v8 = vpack.c.bf16 %v42_v5, %v38_v3  ;;  %v37_v10 = vld [vmem:[#allocation4 + $0x10] sm:$0xff]  ;;  %v44_v12 = vld [vmem:[#allocation4 + $0x48] sm:$0xff] }
  0x16   :  { %v341_v9 = vpack.c.bf16 %v39_v7, %v35_v6  ;;  %v41_v11 = vld [vmem:[#allocation4 + $0x30] sm:$0xff]  ;;  %v48_v14 = vld [vmem:[#allocation4 + $0x68] sm:$0xff]  ;;  %v46_v15 = vld [vmem:[#allocation4 + $0x58] sm:$0xff] }
  0x17   :  { %340 = vmatprep.subr.bf16.mxu0 %v339_v4  ;;  %v365_v13 = vpack.c.bf16 %v41_v11, %v37_v10  ;;  %v50_v16 = vld [vmem:[#allocation4 + $0x78] sm:$0xff]  ;;  %364 = vmatprep.subr.bf16.mxu1 %v363_v8  ;;  %v343_v17 = vpack.c.bf16 %v48_v14, %v44_v12  ;;  %v43_v19 = vld [vmem:[#allocation4 + $0x40] sm:$0xff]  ;;  %v45_v21 = vld [vmem:[#allocation4 + $0x50] sm:$0xff] }
  0x18   :  { %342 = vmatpush1.bf16.msra.mxu0 %v341_v9  ;;  %v367_v18 = vpack.c.bf16 %v50_v16, %v46_v15  ;;  %v47_v20 = vld [vmem:[#allocation4 + $0x60] sm:$0xff]  ;;  %v49_v23 = vld [vmem:[#allocation4 + $0x70] sm:$0xff]  ;;  %v52_v24 = vld [vmem:[#allocation4 + $0x88] sm:$0xff] }
  0x19   :  { %366 = vmatpush1.bf16.msra.mxu1 %v365_v13  ;;  %v345_v22 = vpack.c.bf16 %v47_v20, %v43_v19  ;;  %v56_v25 = vld [vmem:[#allocation4 + $0xa8] sm:$0xff]  ;;  %344 = vmatprep.subr.bf16.mxu0 %v343_v17  ;;  %v369_v26 = vpack.c.bf16 %v49_v23, %v45_v21  ;;  %v54_v28 = vld [vmem:[#allocation4 + $0x98] sm:$0xff]  ;;  %v51_v30 = vld [vmem:[#allocation4 + $0x80] sm:$0xff] }
  0x1a   :  { %368 = vmatprep.subr.bf16.mxu1 %v367_v18  ;;  %v347_v27 = vpack.c.bf16 %v56_v25, %v52_v24  ;;  %v58_v29 = vld [vmem:[#allocation4 + $0xb8] sm:$0xff]  ;;  %v55_v32 = vld [vmem:[#allocation4 + $0xa0] sm:$0xff]  ;;  %v53_v33 = vld [vmem:[#allocation4 + $0x90] sm:$0xff] }
  0x1b   :  { %v371_v31 = vpack.c.bf16 %v58_v29, %v54_v28  ;;  %v57_v34 = vld [vmem:[#allocation4 + $0xb0] sm:$0xff]  ;;  %v349_v35 = vpack.c.bf16 %v55_v32, %v51_v30  ;;  %v60_v36 = vld [vmem:[#allocation4 + $0xc8] sm:$0xff]  ;;  %v62_v38 = vld [vmem:[#allocation4 + $0xd8] sm:$0xff] }
  0x1c   :  { %346 = vmatpush1.bf16.msra.mxu0 %v345_v22  ;;  %v64_v37 = vld [vmem:[#allocation4 + $0xe8] sm:$0xff]  ;;  %v373_v39 = vpack.c.bf16 %v57_v34, %v53_v33  ;;  %v66_v41 = vld [vmem:[#allocation4 + $0xf8] sm:$0xff]  ;;  %v59_v42 = vld [vmem:[#allocation4 + $0xc0] sm:$0xff] }
  0x1d   :  { %370 = vmatpush1.bf16.msra.mxu1 %v369_v26  ;;  %348 = vmatprep.subr.bf16.mxu0 %v347_v27  ;;  %v351_v40 = vpack.c.bf16 %v64_v37, %v60_v36  ;;  %v63_v43 = vld [vmem:[#allocation4 + $0xe0] sm:$0xff]  ;;  %v375_v44 = vpack.c.bf16 %v66_v41, %v62_v38  ;;  %v61_v45 = vld [vmem:[#allocation4 + $0xd0] sm:$0xff]  ;;  %v68_v47 = vld [vmem:[#allocation4 + $0x108] sm:$0xff] }
  0x1e   :  { %372 = vmatprep.subr.bf16.mxu1 %v371_v31  ;;  %v65_v46 = vld [vmem:[#allocation4 + $0xf0] sm:$0xff]  ;;  %v72_v48 = vld [vmem:[#allocation4 + $0x128] sm:$0xff]  ;;  %v70_v49 = vld [vmem:[#allocation4 + $0x118] sm:$0xff]  ;;  %v353_v51 = vpack.c.bf16 %v63_v43, %v59_v42 }
  0x1f   :  { %v74_v50 = vld [vmem:[#allocation4 + $0x138] sm:$0xff]  ;;  %v377_v52 = vpack.c.bf16 %v65_v46, %v61_v45  ;;  %v355_v53 = vpack.c.bf16 %v72_v48, %v68_v47  ;;  %v67_v54 = vld [vmem:[#allocation4 + $0x100] sm:$0xff]  ;;  %v69_v56 = vld [vmem:[#allocation4 + $0x110] sm:$0xff]  ;;  %v283_v46 = vstv %s529_s2  ;;  %s468_s2 = smov [#allocation7]  }
  0x20   :  { %350 = vmatpush1.bf16.msra.mxu0 %v349_v35  ;;  %v71_v55 = vld [vmem:[#allocation4 + $0x120] sm:$0xff]  ;;  %v379_v57 = vpack.c.bf16 %v74_v50, %v70_v49  ;;  %v73_v58 = vld [vmem:[#allocation4 + $0x130] sm:$0xff]  ;;  %v76_v59 = vld [vmem:[#allocation4 + $0x148] sm:$0xff] }
  0x21   :  { %374 = vmatpush1.bf16.msra.mxu1 %v373_v39  ;;  %352 = vmatprep.subr.bf16.mxu0 %v351_v40  ;;  %v80_v60 = vld [vmem:[#allocation4 + $0x168] sm:$0xff]  ;;  %v78_v61 = vld [vmem:[#allocation4 + $0x158] sm:$0xff]  ;;  %v357_v63 = vpack.c.bf16 %v71_v55, %v67_v54  ;;  %v381_v0 = vpack.c.bf16 %v73_v58, %v69_v56  ;;  %v75_v2 = vld [vmem:[#allocation4 + $0x140] sm:$0xff] }
  0x22   :  { %376 = vmatprep.subr.bf16.mxu1 %v375_v44  ;;  %v82_v62 = vld [vmem:[#allocation4 + $0x178] sm:$0xff]  ;;  %v359_v1 = vpack.c.bf16 %v80_v60, %v76_v59  ;;  %v79_v3 = vld [vmem:[#allocation4 + $0x160] sm:$0xff]  ;;  %v77_v5 = vld [vmem:[#allocation4 + $0x150] sm:$0xff] }
  0x23   :  { %v383_v4 = vpack.c.bf16 %v82_v62, %v78_v61  ;;  %v81_v6 = vld [vmem:[#allocation4 + $0x170] sm:$0xff]  ;;  %v361_v7 = vpack.c.bf16 %v79_v3, %v75_v2  ;;  %v84_v9 = vld [vmem:[#allocation4 + $0x188] sm:$0xf]  ;;  %v86_v10 = vld [vmem:[#allocation4 + $0x198] sm:$0xf] }
  0x24   :  { %354 = vmatpush1.bf16.msra.mxu0 %v353_v51  ;;  %v385_v8 = vpack.c.bf16 %v81_v6, %v77_v5  ;;  %v83_v11 = vld [vmem:[#allocation4 + $0x180] sm:$0xf]  ;;  %v85_v12 = vld [vmem:[#allocation4 + $0x190] sm:$0xf]  ;;  %v289_v51 = vstv %s530_s3  ;;  %s320_s3 = sshll.u32 %s468_s2, 4  ;;  %s321_s3 = int_to_ptr.vmem [resolvable:$true] %s320_s3 }
  0x25   :  { %378 = vmatpush1.bf16.msra.mxu1 %v377_v52  ;;  %356 = vmatprep.subr.bf16.mxu0 %v355_v53  ;;  %v34_v13 = vld [vmem:[%s527_s0] sm:$0xff]  ;;  %s438_s7 = scalar_lea.vmem %s321_s3, 512  ;;  %p443_p9 = scmp.lt.s32.totalorder %s321_s3, %s321_s3 }
  0x26   :  { %380 = vmatprep.subr.bf16.mxu1 %v379_v57  ;;  %p439_p8 = scmp.ne.s32.totalorder %s321_s3, %s438_s7  ;;  %p444_p10 = scmp.lt.s32.totalorder %s438_s7, %s438_s7 }
  0x28   :  { %358 = vmatpush1.bf16.msra.mxu0 %v357_v63  ;;  %p445_p11 = por %p444_p10, %p443_p9 }
  0x29   :  { %382 = vmatpush1.bf16.msra.mxu1 %v381_v0  ;;  %360 = vmatprep.subr.bf16.mxu0 %v359_v1 }
  0x2a   :  { %384 = vmatprep.subr.bf16.mxu1 %v383_v4  ;;  %p446_p12 = pnand %p445_p11, %p439_p8 }
  0x2c   :  { %362 = vmatpush1.bf16.msra.mxu0 %v361_v7 }
  0x2d   :  { %386 = vmatpush1.bf16.msra.mxu1 %v385_v8  ;;  %329 = vmatprep.subr.msk.mxu0 %vm91_vm0, %v84_v9 }
  0x2e   :  { %332 = vmatprep.subr.msk.mxu1 %vm91_vm0, %v86_v10 }
  0x30   :  { %330 = vmatpush1.msk.msra.mxu0 %vm91_vm0, %v83_v11 }
  0x31   :  { %333 = vmatpush1.msk.msra.mxu1 %vm91_vm0, %v85_v12  ;;  %331 = vmatmul.mubr.msk.f32.vlgmr.msra.gmra.mrb[0].mxu0 %vm87_vm1, %v34_v13 }
  0x32   :  { %334 = vmatmul.mubr.msk.f32.vlgmr.msra.gmra.mrb[0].mxu1 %vm87_vm1, %v34_v13 }
 0x104   :  { %v170_v14 = vpop.f32.mrb[0].mxu0 }
 0x105   :  { %v246_v15 = vmul.f32 0.5, %v170_v14  ;;  %v241_v16 = vpop.f32.mrb[0].mxu1  ;;  %v172_v17 = vpop.f32.mrb[1].mxu0 }
 0x106   :  { %v248_v18 = vmul.f32 0.5, %v241_v16  ;;  %v247_v19 = vmul.f32 0.5, %v172_v17  ;;  %v243_v20 = vpop.f32.mrb[1].mxu1 }
 0x107   :  { %392 = vtanh.f32 %v246_v15  ;;  %v249_v21 = vmul.f32 0.5, %v243_v20 }
 0x108   :  { %394 = vtanh.f32 %v248_v18 }
 0x109   :  { %396 = vtanh.f32 %v247_v19 }
 0x10a   :  { %398 = vtanh.f32 %v249_v21 }
 0x111   :  { %v393_v22 = vpop.eup %392 }
 0x112   :  { %v395_v23 = vpop.eup %394  ;;  %v254_v24 = vmul.f32 0.5, %v393_v22 }
 0x113   :  { %v397_v25 = vpop.eup %396  ;;  %v256_v26 = vmul.f32 0.5, %v395_v23 }
 0x114   :  { %v399_v27 = vpop.eup %398  ;;  %v258_v28 = vadd.f32 0.5, %v254_v24  ;;  %v255_v29 = vmul.f32 0.5, %v397_v25 }
 0x115   :  { %v260_v30 = vadd.f32 0.5, %v256_v26  ;;  %v257_v31 = vmul.f32 0.5, %v399_v27 }
 0x116   :  { %v335_v32 = vadd.f32 -0.85, %v258_v28  ;;  %v259_v33 = vadd.f32 0.5, %v255_v29 }
 0x117   :  { %v337_v34 = vadd.f32 -0.85, %v260_v30  ;;  %v261_v35 = vadd.f32 0.5, %v257_v31 }
 0x118   :  { %v266_v36 = vmul.f32 0.5, %v335_v32  ;;  %v336_v37 = vadd.f32 -0.85, %v259_v33 }
 0x119   :  { %v268_v38 = vmul.f32 0.5, %v337_v34  ;;  %v338_v39 = vadd.f32 -0.85, %v261_v35 }
 0x11a   :  { %400 = vtanh.f32 %v266_v36  ;;  %v267_v40 = vmul.f32 0.5, %v336_v37 }
 0x11b   :  { %402 = vtanh.f32 %v268_v38  ;;  %v269_v41 = vmul.f32 0.5, %v338_v39 }
 0x11c   :  { %404 = vtanh.f32 %v267_v40 }
 0x11d   :  { %406 = vtanh.f32 %v269_v41 }
 0x124   :  { %v401_v42 = vpop.eup %400 }
 0x125   :  { %v403_v43 = vpop.eup %402  ;;  %v274_v44 = vmul.f32 0.5, %v401_v42 }
 0x126   :  { %v405_v45 = vpop.eup %404  ;;  %v276_v47 = vmul.f32 0.5, %v403_v43 }
 0x127   :  { %v407_v48 = vpop.eup %406  ;;  %v278_v49 = vadd.f32 0.5, %v274_v44  ;;  %v275_v50 = vmul.f32 0.5, %v405_v45 }
 0x128   :  { %v280_v52 = vadd.f32 0.5, %v276_v47  ;;  %v277_v53 = vmul.f32 0.5, %v407_v48 }
 0x129   :  { %v284_v54 = vmul.f32 %v283_v46, %v278_v49  ;;  %v279_v55 = vadd.f32 0.5, %v275_v50 }
 0x12a   :  { %v286_v56 = vmul.f32 %v283_v46, %v280_v52  ;;  %v281_v57 = vadd.f32 0.5, %v277_v53 }
 0x12b   :  { %v290_v58 = vadd.f32 %v289_v51, %v284_v54  ;;  %v285_v59 = vmul.f32 %v283_v46, %v279_v55 }
 0x12c   :  { %v292_v60 = vadd.f32 %v289_v51, %v286_v56  ;;  %v287_v61 = vmul.f32 %v283_v46, %v281_v57 }
 0x12d   :  { %v294_v62 = vmul.f32 0.5, %v290_v58  ;;  %v291_v63 = vadd.f32 %v289_v51, %v285_v59 }
 0x12e   :  { %v296_v0 = vmul.f32 0.5, %v292_v60  ;;  %v293_v1 = vadd.f32 %v289_v51, %v287_v61 }
 0x12f   :  { %v295_v2 = vmul.f32 0.5, %v291_v63  ;;  %408 = vtanh.f32 %v294_v62 }
 0x130   :  { %v297_v3 = vmul.f32 0.5, %v293_v1  ;;  %410 = vtanh.f32 %v296_v0 }
 0x131   :  { %412 = vtanh.f32 %v295_v2 }
 0x132   :  { %414 = vtanh.f32 %v297_v3 }
 0x139   :  { %v409_v4 = vpop.eup %408 }
 0x13a   :  { %v411_v5 = vpop.eup %410  ;;  %v302_v6 = vmul.f32 0.5, %v409_v4 }
 0x13b   :  { %v413_v7 = vpop.eup %412  ;;  %v304_v8 = vmul.f32 0.5, %v411_v5 }
 0x13c   :  { %v415_v9 = vpop.eup %414  ;;  %v303_v10 = vmul.f32 0.5, %v413_v7  ;;  %v306_v11 = vadd.f32 0.5, %v302_v6 }
 0x13d   :  { %v305_v12 = vmul.f32 0.5, %v415_v9  ;;  %v308_v13 = vadd.f32 0.5, %v304_v8 }
 0x13e   :  { %v307_v14 = vadd.f32 0.5, %v303_v10  ;;  %310 = vst [vmem:[#allocation7] sm:$0xff] %v306_v11 }
 0x13f   :  { %v309_v15 = vadd.f32 0.5, %v305_v12  ;;  %312 = vst [vmem:[#allocation7 + $0x10] sm:$0xff] %v308_v13 }
 0x140   :  { %311 = vst [vmem:[#allocation7 + $0x8] sm:$0xff] %v307_v14 }
 0x141   :  { %313 = vst [vmem:[#allocation7 + $0x18] sm:$0xff] %v309_v15 }
 0x142   :  { %449 = shalt.err (!%p446_p12)
}
 0x143   :  { %s450_s10 = scalar_lea.hbm %s531_s4, 512 }
 0x144   :  { %p451_p13 = scmp.ne.s32.totalorder %s531_s4, %s450_s10  ;;  %p454_p0 = scmp.lt.u32.totalorder %s450_s10, %s531_s4 }
 0x146   :  { %p456_p1 = pnand %p454_p0, %p451_p13 }
 0x148   :  { %459 = shalt.err (!%p456_p1)
}
 0x149   :  { %323 = dma.vmem_to_hbm [thread:$0]  %s321_s3, 512, %s531_s4, [#allocation6]  }
 0x14a   :  { %462 = dma.done.wait [#allocation6], 512  }
 0x14b   :  { %463 = vsyncadd [#allocation6], 4294966784 }
 0x14c   :  { %327 = vsyncpa [#allocation5], 1 }
 0x14d   :  { %328 = vsyncpa [#allocation6], 1 }

</bundles_post_ra>
